<compile_context>
chip_gen: v5e
topology: v5e:2x2
jax: 0.10.0
libtpu: 0.0.40
codegen_flags: <defaults>
</compile_context>

<pallas_src>
import functools

import jax
import jax.numpy as jnp
from jax import lax
from jax.experimental import pallas as pl
from jax.experimental.pallas import tpu as pltpu


def _dc_bce_partial_kernel(x_ref, t_ref, inter_ref, pred_ref, gt_ref, bce_ref,
                           *, hw, col_tile, tiles_per_shard):
    s = pl.program_id(0)          # shard (parallel; one per TensorCore on v7x)
    k = pl.program_id(1)          # column tile within the shard (reduction)

    @pl.when(k == 0)
    def _init():
        inter_ref[...] = jnp.zeros_like(inter_ref)
        pred_ref[...] = jnp.zeros_like(pred_ref)
        gt_ref[...] = jnp.zeros_like(gt_ref)
        bce_ref[...] = jnp.zeros_like(bce_ref)

    x = x_ref[...].astype(jnp.float32)          # (BC, col_tile)
    t = t_ref[...].astype(jnp.float32)

    p = jax.nn.sigmoid(x)
    # BCEWithLogits, stable, reusing p (2 EUP ops/elem instead of 3):
    #   max(x,0) - x*t + log1p(exp(-|x|)) == max(x,0) - x*t - log(p if x>=0 else 1-p)
    bce = jnp.maximum(x, 0.0) - x * t - jnp.log(jnp.where(x >= 0.0, p, 1.0 - p))

    # First logical (unclamped) global column of this tile. The index_map
    # clamps the DMA source block, so out-of-range / duplicated tiles and the
    # ragged tail of the last real tile are dealt with below.
    col_start = (s * tiles_per_shard + k) * col_tile

    def accumulate(pv, tv, bv):
        # Per-(b,c)-row partial sums; outputs (1, BC, 1) are per-shard
        # accumulators resident in VMEM across the reduction axis.
        inter_ref[...] += jnp.sum(pv * tv, axis=1, keepdims=True)[None]
        pred_ref[...] += jnp.sum(pv, axis=1, keepdims=True)[None]
        gt_ref[...] += jnp.sum(tv, axis=1, keepdims=True)[None]
        bce_ref[...] += jnp.sum(bv, axis=1, keepdims=True)[None]

    full_tile = col_start + col_tile <= hw      # all lanes valid (common case)
    in_range = col_start < hw                   # at least one valid lane

    @pl.when(full_tile)
    def _full():
        # Mask-free fast path: no iota / compare / selects on interior tiles.
        accumulate(p, t, bce)

    @pl.when(jnp.logical_and(in_range, jnp.logical_not(full_tile)))
    def _ragged():
        col = col_start + lax.broadcasted_iota(jnp.int32, x.shape, 1)
        valid = col < hw
        # Select (not multiply) so garbage (possibly NaN/Inf) in unfetched
        # VMEM lanes never leaks into the sums.
        accumulate(jnp.where(valid, p, 0.0),
                   jnp.where(valid, t, 0.0),
                   jnp.where(valid, bce, 0.0))
    # Tiles with col_start >= hw (clamped duplicates from the shard split)
    # skip both branches and contribute nothing.


@functools.partial(
    jax.jit, static_argnames=("weight_ce", "weight_dice", "smooth", "col_tile"))
def dc_and_bce_loss(net_output, target, *, weight_ce=1.0, weight_dice=1.0,
                    smooth=1e-5, col_tile=None):
    """Forward pass of DC_and_BCE_loss (use_ignore_label=False)."""
    assert net_output.shape == target.shape, "target must be one-hot / same shape"
    B, C, H, W = net_output.shape
    BC, HW = B * C, H * W

    # Flatten to rows = (batch, channel) pairs (sublanes), cols = spatial
    # (lanes). No dtype cast and no padding here (both would re-stream the
    # tensors through HBM); the kernel casts and masks instead.
    x = net_output.reshape(BC, HW)
    t = target.reshape(BC, HW)
    x_bytes = jnp.dtype(x.dtype).itemsize
    t_bytes = jnp.dtype(t.dtype).itemsize

    if col_tile is None:
        # Size the column tile against a VMEM byte budget (2 inputs x 2
        # pipeline buffers) so each grid step moves multiple MiB and per-step
        # overhead (~0.35us) is amortized, while staying well inside scoped
        # VMEM on every generation (v5e/v6e/v7x).
        input_budget = 16 * 1024 * 1024
        per_col = 2 * BC * (x_bytes + t_bytes)      # bytes/column, double-buffered
        col_tile = (input_budget // per_col) // 128 * 128
        col_tile = int(max(128, min(col_tile, pl.cdiv(HW, 128) * 128)))
    assert col_tile % 128 == 0

    num_tiles = pl.cdiv(HW, col_tile)
    num_shards = 2 if num_tiles >= 2 else 1          # v7x: one shard per TensorCore
    tiles_per_shard = pl.cdiv(num_tiles, num_shards)

    def in_map(s, k):
        tile = s * tiles_per_shard + k
        # Clamp so the DMA never reads past the array; the kernel skips or
        # masks the logically out-of-range columns so they contribute zero.
        return (0, jnp.minimum(tile, num_tiles - 1))

    out_map = lambda s, k: (s, 0, 0)

    kernel = functools.partial(
        _dc_bce_partial_kernel,
        hw=HW, col_tile=col_tile, tiles_per_shard=tiles_per_shard)

    n = BC * HW
    cost = pl.CostEstimate(
        flops=12 * n,
        transcendentals=2 * n,
        bytes_accessed=n * (x_bytes + t_bytes) + 4 * num_shards * BC * 4,
    )

    acc_shape = jax.ShapeDtypeStruct((num_shards, BC, 1), jnp.float32)
    inter, pred, gt, bce = pl.pallas_call(
        kernel,
        out_shape=(acc_shape,) * 4,
        grid_spec=pltpu.PrefetchScalarGridSpec(
            num_scalar_prefetch=0,
            grid=(num_shards, tiles_per_shard),
            in_specs=[
                pl.BlockSpec((BC, col_tile), in_map),
                pl.BlockSpec((BC, col_tile), in_map),
            ],
            out_specs=(pl.BlockSpec((1, BC, 1), out_map),) * 4,
        ),
        compiler_params=pltpu.CompilerParams(
            dimension_semantics=("parallel", "arbitrary"),
            vmem_limit_bytes=48 * 1024 * 1024,
        ),
        cost_estimate=cost,
    )(x, t)

    # Tiny finalize (dice, means, weighting) fused into the same jit program.
    inter = jnp.sum(inter[:, :, 0], axis=0)          # (BC,)
    pred = jnp.sum(pred[:, :, 0], axis=0)
    gt = jnp.sum(gt[:, :, 0], axis=0)
    dc = (2.0 * inter + smooth) / jnp.maximum(gt + pred + smooth, 1e-8)
    dc_loss = -jnp.mean(dc)
    ce_loss = jnp.sum(bce) / n
    return weight_ce * ce_loss + weight_dice * dc_loss


def _reference(net_output, target, weight_ce=1.0, weight_dice=1.0, smooth=1e-5):
    """Plain-JAX mirror of the PyTorch forward for validation."""
    x = net_output.astype(jnp.float32)
    t = target.astype(jnp.float32)
    p = jax.nn.sigmoid(x)
    axes = (2, 3)
    intersect = jnp.sum(p * t, axis=axes)
    sum_pred = jnp.sum(p, axis=axes)
    sum_gt = jnp.sum(t, axis=axes)
    dc = (2.0 * intersect + smooth) / jnp.maximum(sum_gt + sum_pred + smooth, 1e-8)
    dc_loss = -jnp.mean(dc)
    bce = jnp.maximum(x, 0.0) - x * t + jnp.log1p(jnp.exp(-jnp.abs(x)))
    ce_loss = jnp.mean(bce)
    return weight_ce * ce_loss + weight_dice * dc_loss


if __name__ == "__main__":
    key = jax.random.PRNGKey(0)

    # Case 1: small NCHW, 128-aligned spatial size, auto tile (single shard,
    # full-tile fast path).
    k1, k2, key = jax.random.split(key, 3)
    B, C, H, W = 2, 4, 16, 16
    net_output = jax.random.normal(k1, (B, C, H, W), dtype=jnp.float32)
    target = (jax.random.uniform(k2, (B, C, H, W)) > 0.5).astype(jnp.float32)

    loss = jax.block_until_ready(dc_and_bce_loss(net_output, target))
    ref = _reference(net_output, target)
    assert jnp.allclose(loss, ref, rtol=1e-5, atol=1e-5), (loss, ref)

    # Case 2: ragged spatial size + forced small tile to exercise the masked
    # ragged tail, the 2-way shard split and the clamped/duplicated-tile skip.
    k3, k4, key = jax.random.split(key, 3)
    B2, C2, H2, W2 = 2, 3, 9, 31
    net_output2 = jax.random.normal(k3, (B2, C2, H2, W2), dtype=jnp.float32)
    target2 = (jax.random.uniform(k4, (B2, C2, H2, W2)) > 0.5).astype(jnp.float32)

    loss2 = jax.block_until_ready(dc_and_bce_loss(net_output2, target2, col_tile=128))
    ref2 = _reference(net_output2, target2)
    assert jnp.allclose(loss2, ref2, rtol=1e-5, atol=1e-5), (loss2, ref2)

    # Case 3: bf16 logits streamed in native dtype, cast in-kernel.
    k5, k6, key = jax.random.split(key, 3)
    net_output3 = jax.random.normal(k5, (B, C, H, W), dtype=jnp.bfloat16)
    target3 = (jax.random.uniform(k6, (B, C, H, W)) > 0.5).astype(jnp.float32)

    loss3 = jax.block_until_ready(dc_and_bce_loss(net_output3, target3))
    ref3 = _reference(net_output3, target3)
    assert jnp.allclose(loss3, ref3, rtol=1e-4, atol=1e-4), (loss3, ref3)

    print("KERNEL_OK")
</pallas_src>

<mosaic_0001>
module attributes {stable_mosaic.version = 11 : i64} {
  func.func @_dc_bce_partial_kernel(%arg0: i32, %arg1: i32, %arg2: memref<8x256xf32, #tpu.memory_space<vmem>>, %arg3: memref<8x256xf32, #tpu.memory_space<vmem>>, %arg4: memref<1x8x1xf32, #tpu.memory_space<vmem>>, %arg5: memref<1x8x1xf32, #tpu.memory_space<vmem>>, %arg6: memref<1x8x1xf32, #tpu.memory_space<vmem>>, %arg7: memref<1x8x1xf32, #tpu.memory_space<vmem>>) attributes {dimension_semantics = [#tpu.dimension_semantics<parallel>, #tpu.dimension_semantics<arbitrary>], iteration_bounds = array<i64: 1, 1>, scalar_prefetch = 0 : i64, scratch_operands = 0 : i64, tpu.core_type = #tpu.core_type<tc>, window_params = [{transform_indices = @transform_0, window_bounds = array<i64: 8, 256>}, {transform_indices = @transform_1, window_bounds = array<i64: 8, 256>}, {transform_indices = @transform_2, window_bounds = array<i64: 1, 8, 1>}, {transform_indices = @transform_3, window_bounds = array<i64: 1, 8, 1>}, {transform_indices = @transform_4, window_bounds = array<i64: 1, 8, 1>}, {transform_indices = @transform_5, window_bounds = array<i64: 1, 8, 1>}]} {
    %c0_i32 = arith.constant 0 : i32
    %0 = arith.cmpi eq, %arg1, %c0_i32 : i32
    %1 = arith.extui %0 : i1 to i32
    %c0_i32_0 = arith.constant 0 : i32
    %2 = arith.cmpi ne, %1, %c0_i32_0 : i32
    scf.if %2 {
      %cst_12 = arith.constant 0.000000e+00 : f32
      %33 = vector.broadcast %cst_12 : f32 to vector<1x8x1xf32>
      %c0_13 = arith.constant 0 : index
      %c0_14 = arith.constant 0 : index
      %c0_15 = arith.constant 0 : index
      %34 = vector.load %arg4[%c0_13, %c0_14, %c0_15] : memref<1x8x1xf32, #tpu.memory_space<vmem>>, vector<1x8x1xf32>
      tpu.vector_store %arg4[%c0_13, %c0_14, %c0_15], %33 {strides = array<i32>} : memref<1x8x1xf32, #tpu.memory_space<vmem>>, vector<1x8x1xf32>,
      %cst_16 = arith.constant 0.000000e+00 : f32
      %35 = vector.broadcast %cst_16 : f32 to vector<1x8x1xf32>
      %c0_17 = arith.constant 0 : index
      %c0_18 = arith.constant 0 : index
      %c0_19 = arith.constant 0 : index
      %36 = vector.load %arg5[%c0_17, %c0_18, %c0_19] : memref<1x8x1xf32, #tpu.memory_space<vmem>>, vector<1x8x1xf32>
      tpu.vector_store %arg5[%c0_17, %c0_18, %c0_19], %35 {strides = array<i32>} : memref<1x8x1xf32, #tpu.memory_space<vmem>>, vector<1x8x1xf32>,
      %cst_20 = arith.constant 0.000000e+00 : f32
      %37 = vector.broadcast %cst_20 : f32 to vector<1x8x1xf32>
      %c0_21 = arith.constant 0 : index
      %c0_22 = arith.constant 0 : index
      %c0_23 = arith.constant 0 : index
      %38 = vector.load %arg6[%c0_21, %c0_22, %c0_23] : memref<1x8x1xf32, #tpu.memory_space<vmem>>, vector<1x8x1xf32>
      tpu.vector_store %arg6[%c0_21, %c0_22, %c0_23], %37 {strides = array<i32>} : memref<1x8x1xf32, #tpu.memory_space<vmem>>, vector<1x8x1xf32>,
      %cst_24 = arith.constant 0.000000e+00 : f32
      %39 = vector.broadcast %cst_24 : f32 to vector<1x8x1xf32>
      %c0_25 = arith.constant 0 : index
      %c0_26 = arith.constant 0 : index
      %c0_27 = arith.constant 0 : index
      %40 = vector.load %arg7[%c0_25, %c0_26, %c0_27] : memref<1x8x1xf32, #tpu.memory_space<vmem>>, vector<1x8x1xf32>
      tpu.vector_store %arg7[%c0_25, %c0_26, %c0_27], %39 {strides = array<i32>} : memref<1x8x1xf32, #tpu.memory_space<vmem>>, vector<1x8x1xf32>,
    } else {
    }
    %c0 = arith.constant 0 : index
    %c0_1 = arith.constant 0 : index
    %3 = vector.load %arg2[%c0, %c0_1] : memref<8x256xf32, #tpu.memory_space<vmem>>, vector<8x256xf32>
    %c0_2 = arith.constant 0 : index
    %c0_3 = arith.constant 0 : index
    %4 = vector.load %arg3[%c0_2, %c0_3] : memref<8x256xf32, #tpu.memory_space<vmem>>, vector<8x256xf32>
    %5 = arith.negf %3 : vector<8x256xf32>
    %6 = math.exp %5 : vector<8x256xf32>
    %cst = arith.constant 1.000000e+00 : f32
    %7 = vector.broadcast %cst : f32 to vector<8x256xf32>
    %8 = arith.addf %7, %6 : vector<8x256xf32>
    %9 = arith.divf %7, %8 : vector<8x256xf32>
    %cst_4 = arith.constant 0.000000e+00 : f32
    %10 = vector.broadcast %cst_4 : f32 to vector<8x256xf32>
    %11 = arith.maximumf %3, %10 : vector<8x256xf32>
    %12 = arith.mulf %3, %4 : vector<8x256xf32>
    %13 = arith.subf %11, %12 : vector<8x256xf32>
    %cst_5 = arith.constant 0.000000e+00 : f32
    %14 = vector.broadcast %cst_5 : f32 to vector<8x256xf32>
    %15 = arith.cmpf oge, %3, %14 : vector<8x256xf32>
    %cst_6 = arith.constant 1.000000e+00 : f32
    %16 = vector.broadcast %cst_6 : f32 to vector<8x256xf32>
    %17 = arith.subf %16, %9 : vector<8x256xf32>
    %18 = arith.select %15, %9, %17 : vector<8x256xi1>, vector<8x256xf32>
    %19 = math.log %18 : vector<8x256xf32>
    %20 = arith.subf %13, %19 : vector<8x256xf32>
    %c1_i32 = arith.constant 1 : i32
    %21 = arith.muli %arg0, %c1_i32 : i32
    %22 = arith.addi %21, %arg1 : i32
    %c256_i32 = arith.constant 256 : i32
    %23 = arith.muli %22, %c256_i32 : i32
    %c256_i32_7 = arith.constant 256 : i32
    %24 = arith.addi %23, %c256_i32_7 : i32
    %c256_i32_8 = arith.constant 256 : i32
    %25 = arith.cmpi sle, %24, %c256_i32_8 : i32
    %c256_i32_9 = arith.constant 256 : i32
    %26 = arith.cmpi slt, %23, %c256_i32_9 : i32
    %27 = arith.extui %25 : i1 to i32
    %c0_i32_10 = arith.constant 0 : i32
    %28 = arith.cmpi ne, %27, %c0_i32_10 : i32
    scf.if %28 {
      %c0_12 = arith.constant 0 : index
      %c0_13 = arith.constant 0 : index
      %c0_14 = arith.constant 0 : index
      %33 = vector.load %arg4[%c0_12, %c0_13, %c0_14] : memref<1x8x1xf32, #tpu.memory_space<vmem>>, vector<1x8x1xf32>
      %34 = arith.mulf %9, %4 : vector<8x256xf32>
      %cst_15 = arith.constant dense<0.000000e+00> : vector<8xf32>
      %35 = vector.multi_reduction <add>, %34, %cst_15 [1] : vector<8x256xf32> to vector<8xf32>
      %36 = vector.shape_cast %35 : vector<8xf32> to vector<8x1xf32>
      %37 = vector.shape_cast %36 : vector<8x1xf32> to vector<1x8x1xf32>
      %38 = arith.addf %33, %37 : vector<1x8x1xf32>
      %c0_16 = arith.constant 0 : index
      %c0_17 = arith.constant 0 : index
      %c0_18 = arith.constant 0 : index
      %39 = vector.load %arg4[%c0_16, %c0_17, %c0_18] : memref<1x8x1xf32, #tpu.memory_space<vmem>>, vector<1x8x1xf32>
      tpu.vector_store %arg4[%c0_16, %c0_17, %c0_18], %38 {strides = array<i32>} : memref<1x8x1xf32, #tpu.memory_space<vmem>>, vector<1x8x1xf32>,
      %c0_19 = arith.constant 0 : index
      %c0_20 = arith.constant 0 : index
      %c0_21 = arith.constant 0 : index
      %40 = vector.load %arg5[%c0_19, %c0_20, %c0_21] : memref<1x8x1xf32, #tpu.memory_space<vmem>>, vector<1x8x1xf32>
      %cst_22 = arith.constant dense<0.000000e+00> : vector<8xf32>
      %41 = vector.multi_reduction <add>, %9, %cst_22 [1] : vector<8x256xf32> to vector<8xf32>
      %42 = vector.shape_cast %41 : vector<8xf32> to vector<8x1xf32>
      %43 = vector.shape_cast %42 : vector<8x1xf32> to vector<1x8x1xf32>
      %44 = arith.addf %40, %43 : vector<1x8x1xf32>
      %c0_23 = arith.constant 0 : index
      %c0_24 = arith.constant 0 : index
      %c0_25 = arith.constant 0 : index
      %45 = vector.load %arg5[%c0_23, %c0_24, %c0_25] : memref<1x8x1xf32, #tpu.memory_space<vmem>>, vector<1x8x1xf32>
      tpu.vector_store %arg5[%c0_23, %c0_24, %c0_25], %44 {strides = array<i32>} : memref<1x8x1xf32, #tpu.memory_space<vmem>>, vector<1x8x1xf32>,
      %c0_26 = arith.constant 0 : index
      %c0_27 = arith.constant 0 : index
      %c0_28 = arith.constant 0 : index
      %46 = vector.load %arg6[%c0_26, %c0_27, %c0_28] : memref<1x8x1xf32, #tpu.memory_space<vmem>>, vector<1x8x1xf32>
      %cst_29 = arith.constant dense<0.000000e+00> : vector<8xf32>
      %47 = vector.multi_reduction <add>, %4, %cst_29 [1] : vector<8x256xf32> to vector<8xf32>
      %48 = vector.shape_cast %47 : vector<8xf32> to vector<8x1xf32>
      %49 = vector.shape_cast %48 : vector<8x1xf32> to vector<1x8x1xf32>
      %50 = arith.addf %46, %49 : vector<1x8x1xf32>
      %c0_30 = arith.constant 0 : index
      %c0_31 = arith.constant 0 : index
      %c0_32 = arith.constant 0 : index
      %51 = vector.load %arg6[%c0_30, %c0_31, %c0_32] : memref<1x8x1xf32, #tpu.memory_space<vmem>>, vector<1x8x1xf32>
      tpu.vector_store %arg6[%c0_30, %c0_31, %c0_32], %50 {strides = array<i32>} : memref<1x8x1xf32, #tpu.memory_space<vmem>>, vector<1x8x1xf32>,
      %c0_33 = arith.constant 0 : index
      %c0_34 = arith.constant 0 : index
      %c0_35 = arith.constant 0 : index
      %52 = vector.load %arg7[%c0_33, %c0_34, %c0_35] : memref<1x8x1xf32, #tpu.memory_space<vmem>>, vector<1x8x1xf32>
      %cst_36 = arith.constant dense<0.000000e+00> : vector<8xf32>
      %53 = vector.multi_reduction <add>, %20, %cst_36 [1] : vector<8x256xf32> to vector<8xf32>
      %54 = vector.shape_cast %53 : vector<8xf32> to vector<8x1xf32>
      %55 = vector.shape_cast %54 : vector<8x1xf32> to vector<1x8x1xf32>
      %56 = arith.addf %52, %55 : vector<1x8x1xf32>
      %c0_37 = arith.constant 0 : index
      %c0_38 = arith.constant 0 : index
      %c0_39 = arith.constant 0 : index
      %57 = vector.load %arg7[%c0_37, %c0_38, %c0_39] : memref<1x8x1xf32, #tpu.memory_space<vmem>>, vector<1x8x1xf32>
      tpu.vector_store %arg7[%c0_37, %c0_38, %c0_39], %56 {strides = array<i32>} : memref<1x8x1xf32, #tpu.memory_space<vmem>>, vector<1x8x1xf32>,
    } else {
    }
    %true = arith.constant true
    %29 = arith.xori %25, %true : i1
    %30 = arith.andi %26, %29 : i1
    %31 = arith.extui %30 : i1 to i32
    %c0_i32_11 = arith.constant 0 : i32
    %32 = arith.cmpi ne, %31, %c0_i32_11 : i32
    scf.if %32 {
      %33 = tpu.iota {dimensions = array<i32: 1>} : vector<8x256xi32>
      %34 = vector.broadcast %23 : i32 to vector<8x256xi32>
      %35 = arith.addi %34, %33 : vector<8x256xi32>
      %c256_i32_12 = arith.constant 256 : i32
      %36 = vector.broadcast %c256_i32_12 : i32 to vector<8x256xi32>
      %37 = arith.cmpi slt, %35, %36 : vector<8x256xi32>
      %cst_13 = arith.constant 0.000000e+00 : f32
      %38 = vector.broadcast %cst_13 : f32 to vector<8x256xf32>
      %39 = arith.select %37, %9, %38 : vector<8x256xi1>, vector<8x256xf32>
      %cst_14 = arith.constant 0.000000e+00 : f32
      %40 = vector.broadcast %cst_14 : f32 to vector<8x256xf32>
      %41 = arith.select %37, %4, %40 : vector<8x256xi1>, vector<8x256xf32>
      %cst_15 = arith.constant 0.000000e+00 : f32
      %42 = vector.broadcast %cst_15 : f32 to vector<8x256xf32>
      %43 = arith.select %37, %20, %42 : vector<8x256xi1>, vector<8x256xf32>
      %c0_16 = arith.constant 0 : index
      %c0_17 = arith.constant 0 : index
      %c0_18 = arith.constant 0 : index
      %44 = vector.load %arg4[%c0_16, %c0_17, %c0_18] : memref<1x8x1xf32, #tpu.memory_space<vmem>>, vector<1x8x1xf32>
      %45 = arith.mulf %39, %41 : vector<8x256xf32>
      %cst_19 = arith.constant dense<0.000000e+00> : vector<8xf32>
      %46 = vector.multi_reduction <add>, %45, %cst_19 [1] : vector<8x256xf32> to vector<8xf32>
      %47 = vector.shape_cast %46 : vector<8xf32> to vector<8x1xf32>
      %48 = vector.shape_cast %47 : vector<8x1xf32> to vector<1x8x1xf32>
      %49 = arith.addf %44, %48 : vector<1x8x1xf32>
      %c0_20 = arith.constant 0 : index
      %c0_21 = arith.constant 0 : index
      %c0_22 = arith.constant 0 : index
      %50 = vector.load %arg4[%c0_20, %c0_21, %c0_22] : memref<1x8x1xf32, #tpu.memory_space<vmem>>, vector<1x8x1xf32>
      tpu.vector_store %arg4[%c0_20, %c0_21, %c0_22], %49 {strides = array<i32>} : memref<1x8x1xf32, #tpu.memory_space<vmem>>, vector<1x8x1xf32>,
      %c0_23 = arith.constant 0 : index
      %c0_24 = arith.constant 0 : index
      %c0_25 = arith.constant 0 : index
      %51 = vector.load %arg5[%c0_23, %c0_24, %c0_25] : memref<1x8x1xf32, #tpu.memory_space<vmem>>, vector<1x8x1xf32>
      %cst_26 = arith.constant dense<0.000000e+00> : vector<8xf32>
      %52 = vector.multi_reduction <add>, %39, %cst_26 [1] : vector<8x256xf32> to vector<8xf32>
      %53 = vector.shape_cast %52 : vector<8xf32> to vector<8x1xf32>
      %54 = vector.shape_cast %53 : vector<8x1xf32> to vector<1x8x1xf32>
      %55 = arith.addf %51, %54 : vector<1x8x1xf32>
      %c0_27 = arith.constant 0 : index
      %c0_28 = arith.constant 0 : index
      %c0_29 = arith.constant 0 : index
      %56 = vector.load %arg5[%c0_27, %c0_28, %c0_29] : memref<1x8x1xf32, #tpu.memory_space<vmem>>, vector<1x8x1xf32>
      tpu.vector_store %arg5[%c0_27, %c0_28, %c0_29], %55 {strides = array<i32>} : memref<1x8x1xf32, #tpu.memory_space<vmem>>, vector<1x8x1xf32>,
      %c0_30 = arith.constant 0 : index
      %c0_31 = arith.constant 0 : index
      %c0_32 = arith.constant 0 : index
      %57 = vector.load %arg6[%c0_30, %c0_31, %c0_32] : memref<1x8x1xf32, #tpu.memory_space<vmem>>, vector<1x8x1xf32>
      %cst_33 = arith.constant dense<0.000000e+00> : vector<8xf32>
      %58 = vector.multi_reduction <add>, %41, %cst_33 [1] : vector<8x256xf32> to vector<8xf32>
      %59 = vector.shape_cast %58 : vector<8xf32> to vector<8x1xf32>
      %60 = vector.shape_cast %59 : vector<8x1xf32> to vector<1x8x1xf32>
      %61 = arith.addf %57, %60 : vector<1x8x1xf32>
      %c0_34 = arith.constant 0 : index
      %c0_35 = arith.constant 0 : index
      %c0_36 = arith.constant 0 : index
      %62 = vector.load %arg6[%c0_34, %c0_35, %c0_36] : memref<1x8x1xf32, #tpu.memory_space<vmem>>, vector<1x8x1xf32>
      tpu.vector_store %arg6[%c0_34, %c0_35, %c0_36], %61 {strides = array<i32>} : memref<1x8x1xf32, #tpu.memory_space<vmem>>, vector<1x8x1xf32>,
      %c0_37 = arith.constant 0 : index
      %c0_38 = arith.constant 0 : index
      %c0_39 = arith.constant 0 : index
      %63 = vector.load %arg7[%c0_37, %c0_38, %c0_39] : memref<1x8x1xf32, #tpu.memory_space<vmem>>, vector<1x8x1xf32>
      %cst_40 = arith.constant dense<0.000000e+00> : vector<8xf32>
      %64 = vector.multi_reduction <add>, %43, %cst_40 [1] : vector<8x256xf32> to vector<8xf32>
      %65 = vector.shape_cast %64 : vector<8xf32> to vector<8x1xf32>
      %66 = vector.shape_cast %65 : vector<8x1xf32> to vector<1x8x1xf32>
      %67 = arith.addf %63, %66 : vector<1x8x1xf32>
      %c0_41 = arith.constant 0 : index
      %c0_42 = arith.constant 0 : index
      %c0_43 = arith.constant 0 : index
      %68 = vector.load %arg7[%c0_41, %c0_42, %c0_43] : memref<1x8x1xf32, #tpu.memory_space<vmem>>, vector<1x8x1xf32>
      tpu.vector_store %arg7[%c0_41, %c0_42, %c0_43], %67 {strides = array<i32>} : memref<1x8x1xf32, #tpu.memory_space<vmem>>, vector<1x8x1xf32>,
    } else {
    }
    return
  }
  func.func @transform_0(%arg0: i32, %arg1: i32) -> (i32, i32) {
    %c1_i32 = arith.constant 1 : i32
    %0 = arith.muli %arg0, %c1_i32 : i32
    %1 = arith.addi %0, %arg1 : i32
    %c0_i32 = arith.constant 0 : i32
    %2 = arith.minsi %1, %c0_i32 : i32
    %c0_i32_0 = arith.constant 0 : i32
    %c0_i32_1 = arith.constant 0 : i32
    return %c0_i32_0, %2 : i32, i32
  }
  func.func @transform_1(%arg0: i32, %arg1: i32) -> (i32, i32) {
    %c1_i32 = arith.constant 1 : i32
    %0 = arith.muli %arg0, %c1_i32 : i32
    %1 = arith.addi %0, %arg1 : i32
    %c0_i32 = arith.constant 0 : i32
    %2 = arith.minsi %1, %c0_i32 : i32
    %c0_i32_0 = arith.constant 0 : i32
    %c0_i32_1 = arith.constant 0 : i32
    return %c0_i32_0, %2 : i32, i32
  }
  func.func @transform_2(%arg0: i32, %arg1: i32) -> (i32, i32, i32) {
    %c0_i32 = arith.constant 0 : i32
    %c0_i32_0 = arith.constant 0 : i32
    %c0_i32_1 = arith.constant 0 : i32
    return %arg0, %c0_i32, %c0_i32_0 : i32, i32, i32
  }
  func.func @transform_3(%arg0: i32, %arg1: i32) -> (i32, i32, i32) {
    %c0_i32 = arith.constant 0 : i32
    %c0_i32_0 = arith.constant 0 : i32
    %c0_i32_1 = arith.constant 0 : i32
    return %arg0, %c0_i32, %c0_i32_0 : i32, i32, i32
  }
  func.func @transform_4(%arg0: i32, %arg1: i32) -> (i32, i32, i32) {
    %c0_i32 = arith.constant 0 : i32
    %c0_i32_0 = arith.constant 0 : i32
    %c0_i32_1 = arith.constant 0 : i32
    return %arg0, %c0_i32, %c0_i32_0 : i32, i32, i32
  }
  func.func @transform_5(%arg0: i32, %arg1: i32) -> (i32, i32, i32) {
    %c0_i32 = arith.constant 0 : i32
    %c0_i32_0 = arith.constant 0 : i32
    %c0_i32_1 = arith.constant 0 : i32
    return %arg0, %c0_i32, %c0_i32_0 : i32, i32, i32
  }
}

</mosaic_0001>

<bundles_post_ra>
// kernel: dc_and_bce_loss.1
= control target key start
LH: loop header
LB: loop body
LE: loop exit
PB: predicated region body
PF: predicated region fallthrough
CT: control target
= control target key end

     0   :  { %vm83_vm0 = vcmask 7168   ;;  %v272_v11 = vmov 0.0   ;;  %s381_s1 = inlined_call_operand.vmem [shape: f32[8,256], index: 1, kind: input, shape index: {}]   ;;  %s382_s0 = inlined_call_operand.vmem [shape: f32[8,256], index: 0, kind: input, shape index: {}]   ;;  %s383_s4 = inlined_call_operand.vmem [shape: f32[1,8,1], index: 4, kind: output, shape index: {2}]   ;;  %s384_s2 = inlined_call_operand.vmem [shape: f32[1,8,1], index: 2, kind: output, shape index: {0}]   ;;  %s385_s3 = inlined_call_operand.vmem [shape: f32[1,8,1], index: 3, kind: output, shape index: {1}]   ;;  %s386_s5 = inlined_call_operand.vmem [shape: f32[1,8,1], index: 5, kind: output, shape index: {3}]  }
   0x1   :  { %v306_v0 = vld [vmem:[%s381_s1] sm:$0xff]  ;;  %v311_v1 = vld [vmem:[%s381_s1 + $0x8] sm:$0xff]  ;;  %86 = vst.msk [vmem:[%s383_s4] sm:$0xff] %vm83_vm0, %v272_v11 }
   0x2   :  { %v316_v2 = vld [vmem:[%s382_s0] sm:$0xff]  ;;  %v172_v3 = vadd.f32 %v311_v1, %v306_v0  ;;  %v323_v4 = vld [vmem:[%s382_s0 + $0x8] sm:$0xff]  ;;  %84 = vst.msk [vmem:[%s384_s2] sm:$0xff] %vm83_vm0, %v272_v11 }
   0x3   :  { %v257_v5 = vmul.f32 -1.442695, %v316_v2  ;;  %v258_v6 = vmul.f32 -1.442695, %v323_v4  ;;  %85 = vst.msk [vmem:[%s385_s3] sm:$0xff] %vm83_vm0, %v272_v11  ;;  %vm136_vm9 = vcmp.ge.f32.partialorder %v316_v2, 0.0  ;;  %v132_v39 = vmul.f32 %v306_v0, %v316_v2 }
   0x4   :  { %173 = vadd.xlane.f32.xlu1 %v172_v3  ;;  %87 = vst.msk [vmem:[%s386_s5] sm:$0xff] %vm83_vm0, %v272_v11  ;;  %vm137_vm10 = vcmp.ge.f32.partialorder %v323_v4, 0.0  ;;  %v130_v40 = vmax.f32 %v316_v2, 0.0  ;;  %v133_v41 = vmul.f32 %v311_v1, %v323_v4  ;;  %v131_v42 = vmax.f32 %v323_v4, 0.0 }
   0x5   :  { %260 = vpow2.f32 %v257_v5 }
   0x6   :  { %262 = vpow2.f32 %v258_v6  ;;  %v134_v43 = vsub.f32 %v130_v40, %v132_v39  ;;  %v135_v46 = vsub.f32 %v131_v42, %v133_v41 }
   0x8   :  { %v171_v53 = vld [vmem:[%s383_s4] sm:$0xff] }
   0x9   :  { %v156_v56 = vld [vmem:[%s384_s2] sm:$0xff] }
   0xa   :  { %v165_v59 = vld [vmem:[%s385_s3] sm:$0xff] }
   0xb   :  { %v261_v7 = vpop.eup %260  ;;  %v177_v62 = vld [vmem:[%s386_s5] sm:$0xff] }
   0xc   :  { %v263_v8 = vpop.eup %262  ;;  %v98_v9 = vadd.f32 1.0, %v261_v7 }
   0xd   :  { %v99_v10 = vadd.f32 1.0, %v263_v8 }
   0xe   :  { %264 = vrcp.f32 %v98_v9  ;;  %vm105_vm1 = vweird.f32 %v98_v9  ;;  %v111_v15 = vand.u32 2147483648, %v98_v9  ;;  %v109_v18 = vand.u32 2147483647, %v98_v9 }
   0xf   :  { %266 = vrcp.f32 %v99_v10  ;;  %v126_v19 = vand.u32 2147483648, %v99_v10  ;;  %vm120_vm3 = vweird.f32 %v99_v10  ;;  %v124_v21 = vand.u32 2147483647, %v99_v10 }
  0x10   :  { %v112_v23 = vor.u32 1.1754944e-38, %v111_v15  ;;  %vm110_vm6 = vcmp.eq.f32.partialorder %v109_v18, 8.507059e+37 }
  0x11   :  { %v127_v26 = vor.u32 1.1754944e-38, %v126_v19  ;;  %vm125_vm8 = vcmp.eq.f32.partialorder %v124_v21, 8.507059e+37 }
  0x14   :  { %v265_v12 = vpop.eup %264 }
  0x15   :  { %v267_v13 = vpop.eup %266  ;;  %v101_v14 = vmul.f32 %v265_v12, %v98_v9  ;;  %vm106_vm2 = vweird.f32 %v265_v12 }
  0x16   :  { %v116_v16 = vmul.f32 %v267_v13, %v99_v10  ;;  %vm121_vm4 = vweird.f32 %v267_v13  ;;  %vm107_vm5 = vmor %vm105_vm1, %vm106_vm2 }
  0x17   :  { %v102_v17 = vsub.f32 1.0, %v101_v14  ;;  %vm122_vm7 = vmor %vm120_vm3, %vm121_vm4 }
  0x18   :  { %v117_v20 = vsub.f32 1.0, %v116_v16 }
  0x19   :  { %v103_v22 = vmul.f32 %v265_v12, %v102_v17 }
  0x1a   :  { %v118_v24 = vmul.f32 %v267_v13, %v117_v20 }
  0x1b   :  { %v104_v25 = vadd.f32 %v265_v12, %v103_v22 }
  0x1c   :  { %v119_v27 = vadd.f32 %v267_v13, %v118_v24 }
  0x1d   :  { %v108_v28 = vsel %vm107_vm5, %v265_v12, %v104_v25 }
  0x1e   :  { %v113_v29 = vsel %vm110_vm6, %v112_v23, %v108_v28  ;;  %v123_v30 = vsel %vm122_vm7, %v267_v13, %v119_v27 }
  0x1f   :  { %v128_v31 = vsel %vm125_vm8, %v127_v26, %v123_v30  ;;  %v157_v32 = vmul.f32 %v113_v29, %v306_v0  ;;  %v138_v33 = vsub.f32 1.0, %v113_v29 }
  0x20   :  { %v139_v34 = vsub.f32 1.0, %v128_v31  ;;  %v158_v35 = vmul.f32 %v128_v31, %v311_v1  ;;  %v166_v45 = vadd.f32 %v128_v31, %v113_v29 }
  0x21   :  { %v140_v36 = vsel %vm136_vm9, %v113_v29, %v138_v33 }
  0x22   :  { %v159_v37 = vadd.f32 %v158_v35, %v157_v32  ;;  %v141_v38 = vsel %vm137_vm10, %v128_v31, %v139_v34  ;;  %268 = vlog2.f32 %v140_v36 }
  0x23   :  { %270 = vlog2.f32 %v141_v38 }
  0x24   :  { %160 = vadd.xlane.f32.xlu0 %v159_v37 }
  0x28   :  { %v269_v44 = vpop.eup %268 }
  0x29   :  { %v271_v47 = vpop.eup %270  ;;  %v143_v48 = vmul.f32 0.6931472, %v269_v44 }
  0x2a   :  { %v145_v49 = vmul.f32 0.6931472, %v271_v47 }
  0x2b   :  { %v146_v50 = vsub.f32 %v134_v43, %v143_v48 }
  0x2c   :  { %167 = vadd.xlane.f32.xlu0 %v166_v45  ;;  %v147_v51 = vsub.f32 %v135_v46, %v145_v49 }
  0x2e   :  { %v178_v52 = vadd.f32 %v147_v51, %v146_v50 }
  0x30   :  { %179 = vadd.xlane.f32.xlu1 %v178_v52 }
  0x77   :  { %v174_v54 = vpop.xlane.xlu1 %173 }
  0x78   :  { %v175_v55 = vadd.f32 %v174_v54, %v171_v53 }
  0x7a   :  { %176 = vst.msk [vmem:[%s383_s4] sm:$0xff] %vm83_vm0, %v175_v55 }
  0x97   :  { %v161_v57 = vpop.xlane.xlu0 %160 }
  0x98   :  { %v162_v58 = vadd.f32 %v161_v57, %v156_v56 }
  0x9a   :  { %164 = vst.msk [vmem:[%s384_s2] sm:$0xff] %vm83_vm0, %v162_v58 }
  0x9f   :  { %v168_v60 = vpop.xlane.xlu0 %167 }
  0xa0   :  { %v169_v61 = vadd.f32 %v168_v60, %v165_v59 }
  0xa2   :  { %170 = vst.msk [vmem:[%s385_s3] sm:$0xff] %vm83_vm0, %v169_v61 }
  0xa3   :  { %v180_v63 = vpop.xlane.xlu1 %179 }
  0xa4   :  { %v181_v0 = vadd.f32 %v180_v63, %v177_v62 }
  0xa6   :  { %182 = vst.msk [vmem:[%s386_s5] sm:$0xff] %vm83_vm0, %v181_v0 }

</bundles_post_ra>
